<compile_context>
chip_gen: v5e
topology: v5e:2x2
jax: 0.10.0
libtpu: 0.0.40
codegen_flags: <defaults>
</compile_context>

<pallas_src>
import functools

import jax
import jax.numpy as jnp
from jax import lax
from jax.experimental import pallas as pl
from jax.experimental.pallas import tpu as pltpu


def _round_up(n: int, m: int) -> int:
    return ((n + m - 1) // m) * m


def _zsl_kernel(x_ref, emb_ref, out_ref):
    # x_ref:   (tb, Dp)  input rows (zero-padded along D)
    # emb_ref: (tc, Dp)  class-embedding rows (zero-padded along D)
    # out_ref: (tb, tc)  scores, f32
    x = x_ref[...]
    emb = emb_ref[...]

    # Row sum-of-squares in f32 (zero padding along D contributes nothing).
    xf = x.astype(jnp.float32)
    sumsq = jnp.sum(xf * xf, axis=1, keepdims=True)          # (tb, 1)

    # scores = x @ emb.T expressed as a contraction over the last dim of both
    # operands: no materialized transpose, native MXU lowering, f32 accumulate.
    s = lax.dot_general(
        x, emb,
        dimension_numbers=(((1,), (1,)), ((), ())),
        preferred_element_type=jnp.float32,
    )                                                         # (tb, tc) f32

    # x / max(||x||, eps)  ==  scores * rsqrt(max(sumsq, eps^2))
    eps = 1e-12
    inv_norm = lax.rsqrt(jnp.maximum(sumsq, eps * eps))       # (tb, 1), EUP
    out_ref[...] = (s * inv_norm).astype(out_ref.dtype)


@functools.partial(jax.jit, static_argnames=("tb", "tc", "use_bf16"))
def zsl_forward(x, semantic_embeddings, *, tb=256, tc=512, use_bf16=False):
    """x: (B, D) f32, semantic_embeddings: (C, D) f32 -> scores (B, C) f32."""
    B, D = x.shape
    C, D2 = semantic_embeddings.shape
    assert D == D2, "feature dim of x must match semantic embedding dim"

    # Hardware-friendly padded shapes: lanes (last dim) multiple of 128,
    # sublanes multiple of 8, and both grid axes evenly divided by their tile.
    Dp = _round_up(D, 128)
    Bp = _round_up(B, 8)
    Cp = _round_up(C, 128)
    tb = min(tb, Bp)
    tc = min(tc, Cp)
    Bp = _round_up(Bp, tb)
    Cp = _round_up(Cp, tc)

    in_dtype = jnp.bfloat16 if use_bf16 else x.dtype
    xp = jnp.pad(x, ((0, Bp - B), (0, Dp - D))).astype(in_dtype)
    ep = jnp.pad(semantic_embeddings,
                 ((0, Cp - C), (0, Dp - D))).astype(in_dtype)

    grid = (Bp // tb, Cp // tc)
    out = pl.pallas_call(
        _zsl_kernel,
        out_shape=jax.ShapeDtypeStruct((Bp, Cp), jnp.float32),
        grid=grid,
        in_specs=[
            # x tile depends only on i -> stays resident across the j loop.
            pl.BlockSpec((tb, Dp), lambda i, j: (i, 0)),
            pl.BlockSpec((tc, Dp), lambda i, j: (j, 0)),
        ],
        out_specs=pl.BlockSpec((tb, tc), lambda i, j: (i, j)),
        compiler_params=pltpu.CompilerParams(
            dimension_semantics=("parallel", "parallel"),
        ),
    )(xp, ep)

    # Slice away the padding.
    return out[:B, :C]


def zsl_reference(x, semantic_embeddings):
    eps = 1e-12
    norm = jnp.sqrt(jnp.sum(x * x, axis=1, keepdims=True))
    x_n = x / jnp.maximum(norm, eps)
    return x_n @ semantic_embeddings.T


if __name__ == "__main__":
    # Small shapes consistent with the module: feature dim fixed at 300.
    B = 8      # batch
    D = 300    # semantic embedding dim
    C = 16     # num_classes

    key = jax.random.PRNGKey(0)
    kx, ke = jax.random.split(key)
    x = jax.random.normal(kx, (B, D), dtype=jnp.float32)
    semantic_embeddings = jax.random.normal(ke, (C, D), dtype=jnp.float32)

    scores = zsl_forward(x, semantic_embeddings)
    scores = jax.block_until_ready(scores)

    ref = zsl_reference(x, semantic_embeddings)
    assert scores.shape == (B, C)
    assert jnp.allclose(scores, ref, atol=1e-4, rtol=1e-4)

    print("KERNEL_OK")
</pallas_src>

<mosaic_0001>
module attributes {stable_mosaic.version = 11 : i64} {
  func.func @_zsl_kernel(%arg0: i32, %arg1: i32, %arg2: memref<8x384xf32, #tpu.memory_space<vmem>>, %arg3: memref<128x384xf32, #tpu.memory_space<vmem>>, %arg4: memref<8x128xf32, #tpu.memory_space<vmem>>) attributes {dimension_semantics = [#tpu.dimension_semantics<parallel>, #tpu.dimension_semantics<parallel>], iteration_bounds = array<i64: 1, 1>, scalar_prefetch = 0 : i64, scratch_operands = 0 : i64, tpu.core_type = #tpu.core_type<tc>, window_params = [{transform_indices = @transform_0, window_bounds = array<i64: 8, 384>}, {transform_indices = @transform_1, window_bounds = array<i64: 128, 384>}, {transform_indices = @transform_2, window_bounds = array<i64: 8, 128>}]} {
    %c0 = arith.constant 0 : index
    %c0_0 = arith.constant 0 : index
    %0 = vector.load %arg2[%c0, %c0_0] : memref<8x384xf32, #tpu.memory_space<vmem>>, vector<8x384xf32>
    %c0_1 = arith.constant 0 : index
    %c0_2 = arith.constant 0 : index
    %1 = vector.load %arg3[%c0_1, %c0_2] : memref<128x384xf32, #tpu.memory_space<vmem>>, vector<128x384xf32>
    %2 = arith.mulf %0, %0 : vector<8x384xf32>
    %cst = arith.constant dense<0.000000e+00> : vector<8xf32>
    %3 = vector.multi_reduction <add>, %2, %cst [1] : vector<8x384xf32> to vector<8xf32>
    %4 = vector.shape_cast %3 : vector<8xf32> to vector<8x1xf32>
    %cst_3 = arith.constant dense<0.000000e+00> : vector<8x128xf32>
    %5 = tpu.matmul %0, %1, %cst_3 {dimension_numbers = #tpu.dot_dimension_numbers<[1], [1], [0], [0], [0, 0, 1, 0], [], []>} : vector<8x384xf32>, vector<128x384xf32>, vector<8x128xf32> -> vector<8x128xf32>
    %cst_4 = arith.constant 1.000000e-24 : f32
    %6 = vector.broadcast %cst_4 : f32 to vector<8x1xf32>
    %7 = arith.maximumf %4, %6 : vector<8x1xf32>
    %8 = math.rsqrt %7 : vector<8x1xf32>
    %9 = vector.broadcast %8 : vector<8x1xf32> to vector<8x128xf32>
    %10 = arith.mulf %5, %9 : vector<8x128xf32>
    %c0_5 = arith.constant 0 : index
    %c0_6 = arith.constant 0 : index
    %11 = vector.load %arg4[%c0_5, %c0_6] : memref<8x128xf32, #tpu.memory_space<vmem>>, vector<8x128xf32>
    tpu.vector_store %arg4[%c0_5, %c0_6], %10 {strides = array<i32>} : memref<8x128xf32, #tpu.memory_space<vmem>>, vector<8x128xf32>,
    return
  }
  func.func @transform_0(%arg0: i32, %arg1: i32) -> (i32, i32) {
    %c0_i32 = arith.constant 0 : i32
    %c0_i32_0 = arith.constant 0 : i32
    return %arg0, %c0_i32 : i32, i32
  }
  func.func @transform_1(%arg0: i32, %arg1: i32) -> (i32, i32) {
    %c0_i32 = arith.constant 0 : i32
    %c0_i32_0 = arith.constant 0 : i32
    return %arg1, %c0_i32 : i32, i32
  }
  func.func @transform_2(%arg0: i32, %arg1: i32) -> (i32, i32) {
    %c0_i32 = arith.constant 0 : i32
    return %arg0, %arg1 : i32, i32
  }
}

</mosaic_0001>

<bundles_post_ra>
// kernel: zsl_forward.1
= control target key start
LH: loop header
LB: loop body
LE: loop exit
PB: predicated region body
PF: predicated region fallthrough
CT: control target
= control target key end

     0   :  { %s375_s0 = inlined_call_operand.vmem [shape: f32[8,384], index: 0, kind: input, shape index: {}]   ;;  %s376_s1 = inlined_call_operand.vmem [shape: f32[128,384], index: 1, kind: input, shape index: {}]   ;;  %s377_s2 = inlined_call_operand.hbm [shape: f32[8,128], index: 2, kind: output, shape index: {}]  }
   0x1   :  { %v62_v0 = vld [vmem:[%s376_s1 + $0x178] sm:$0xff]  ;;  %v60_v1 = vld [vmem:[%s376_s1 + $0x168] sm:$0xff]  ;;  %v61_v2 = vld [vmem:[%s376_s1 + $0x170] sm:$0xff] }
   0x2   :  { %110 = vmatpush.xpose.msra.mxu2 %v62_v0  ;;  %70 = vmatpush.xpose.msra.mxu0 %v60_v1  ;;  %v59_v3 = vld [vmem:[%s376_s1 + $0x160] sm:$0xff]  ;;  %v57_v4 = vld [vmem:[%s376_s1 + $0x150] sm:$0xff]  ;;  %v58_v5 = vld [vmem:[%s376_s1 + $0x158] sm:$0xff] }
   0x3   :  { %90 = vmatpush.xpose.msra.mxu1 %v61_v2  ;;  %v56_v6 = vld [vmem:[%s376_s1 + $0x148] sm:$0xff]  ;;  %v54_v7 = vld [vmem:[%s376_s1 + $0x138] sm:$0xff]  ;;  %v55_v8 = vld [vmem:[%s376_s1 + $0x140] sm:$0xff] }
   0x4   :  { %v53_v9 = vld [vmem:[%s376_s1 + $0x130] sm:$0xff]  ;;  %v51_v10 = vld [vmem:[%s376_s1 + $0x120] sm:$0xff]  ;;  %v52_v11 = vld [vmem:[%s376_s1 + $0x128] sm:$0xff] }
   0x5   :  { %v243_v12 = vld [vmem:[%s375_s0] sm:$0xff]  ;;  %v248_v13 = vld [vmem:[%s375_s0 + $0x8] sm:$0xff]  ;;  %v253_v14 = vld [vmem:[%s375_s0 + $0x10] sm:$0xff] }
   0x6   :  { %111 = vmatpush.xpose.msra.mxu2 %v59_v3  ;;  %71 = vmatpush.xpose.msra.mxu0 %v57_v4  ;;  %v63_v15 = vmul.f32 %v243_v12, %v243_v12  ;;  %v64_v16 = vmul.f32 %v248_v13, %v248_v13 }
   0x7   :  { %91 = vmatpush.xpose.msra.mxu1 %v58_v5 }
   0xa   :  { %112 = vmatpush.xpose.msra.mxu2 %v56_v6  ;;  %72 = vmatpush.xpose.msra.mxu0 %v54_v7 }
   0xb   :  { %92 = vmatpush.xpose.msra.mxu1 %v55_v8 }
   0xc   :  { %7 = vsyncpa [#allocation3], 0  ;;  %v65_v17 = vmul.f32 %v253_v14, %v253_v14  ;;  %v50_v18 = vld [vmem:[%s376_s1 + $0x118] sm:$0xff]  ;;  %v48_v19 = vld [vmem:[%s376_s1 + $0x108] sm:$0xff]  ;;  %v66_v20 = vadd.f32 %v64_v16, %v63_v15  ;;  %s150_s27 = sshll.u32 %s377_s2, 4  ;;  %s151_s27 = int_to_ptr.hbm [resolvable:$true] %s150_s27 }
   0xd   :  { %v49_v21 = vld [vmem:[%s376_s1 + $0x110] sm:$0xff]  ;;  %v47_v23 = vld [vmem:[%s376_s1 + $0x100] sm:$0xff]  ;;  %v46_v25 = vld [vmem:[%s376_s1 + $0xf8] sm:$0xff] }
   0xe   :  { %113 = vmatpush.xpose.msra.mxu2 %v53_v9  ;;  %73 = vmatpush.xpose.msra.mxu0 %v51_v10  ;;  %v67_v22 = vadd.f32 %v66_v20, %v65_v17  ;;  %v45_v24 = vld [vmem:[%s376_s1 + $0xf0] sm:$0xff]  ;;  %v44_v26 = vld [vmem:[%s376_s1 + $0xe8] sm:$0xff]  ;;  %v42_v27 = vld [vmem:[%s376_s1 + $0xd8] sm:$0xff] }
   0xf   :  { %93 = vmatpush.xpose.msra.mxu1 %v52_v11  ;;  %v43_v28 = vld [vmem:[%s376_s1 + $0xe0] sm:$0xff]  ;;  %v41_v29 = vld [vmem:[%s376_s1 + $0xd0] sm:$0xff]  ;;  %v40_v31 = vld [vmem:[%s376_s1 + $0xc8] sm:$0xff] }
  0x10   :  { %68 = vadd.xlane.f32.xlu0 %v67_v22  ;;  %v39_v30 = vld [vmem:[%s376_s1 + $0xc0] sm:$0xff]  ;;  %v38_v32 = vld [vmem:[%s376_s1 + $0xb8] sm:$0xff]  ;;  %v36_v33 = vld [vmem:[%s376_s1 + $0xa8] sm:$0xff] }
  0x11   :  { %v37_v34 = vld [vmem:[%s376_s1 + $0xb0] sm:$0xff]  ;;  %v35_v35 = vld [vmem:[%s376_s1 + $0xa0] sm:$0xff]  ;;  %v34_v37 = vld [vmem:[%s376_s1 + $0x98] sm:$0xff] }
  0x12   :  { %114 = vmatpush.xpose.msra.mxu2 %v50_v18  ;;  %74 = vmatpush.xpose.msra.mxu0 %v48_v19  ;;  %v33_v36 = vld [vmem:[%s376_s1 + $0x90] sm:$0xff]  ;;  %v32_v38 = vld [vmem:[%s376_s1 + $0x88] sm:$0xff]  ;;  %v30_v39 = vld [vmem:[%s376_s1 + $0x78] sm:$0xff] }
  0x13   :  { %94 = vmatpush.xpose.msra.mxu1 %v49_v21  ;;  %v31_v40 = vld [vmem:[%s376_s1 + $0x80] sm:$0xff]  ;;  %v29_v41 = vld [vmem:[%s376_s1 + $0x70] sm:$0xff]  ;;  %v28_v43 = vld [vmem:[%s376_s1 + $0x68] sm:$0xff] }
  0x14   :  { %v27_v42 = vld [vmem:[%s376_s1 + $0x60] sm:$0xff]  ;;  %v26_v44 = vld [vmem:[%s376_s1 + $0x58] sm:$0xff]  ;;  %v24_v45 = vld [vmem:[%s376_s1 + $0x48] sm:$0xff] }
  0x15   :  { %v25_v46 = vld [vmem:[%s376_s1 + $0x50] sm:$0xff]  ;;  %v23_v47 = vld [vmem:[%s376_s1 + $0x40] sm:$0xff]  ;;  %v22_v49 = vld [vmem:[%s376_s1 + $0x38] sm:$0xff] }
  0x16   :  { %115 = vmatpush.xpose.msra.mxu2 %v47_v23  ;;  %75 = vmatpush.xpose.msra.mxu0 %v45_v24  ;;  %v21_v48 = vld [vmem:[%s376_s1 + $0x30] sm:$0xff]  ;;  %v20_v50 = vld [vmem:[%s376_s1 + $0x28] sm:$0xff]  ;;  %v18_v51 = vld [vmem:[%s376_s1 + $0x18] sm:$0xff] }
  0x17   :  { %95 = vmatpush.xpose.msra.mxu1 %v46_v25  ;;  %v19_v52 = vld [vmem:[%s376_s1 + $0x20] sm:$0xff]  ;;  %v17_v53 = vld [vmem:[%s376_s1 + $0x10] sm:$0xff]  ;;  %v16_v55 = vld [vmem:[%s376_s1 + $0x8] sm:$0xff] }
  0x18   :  { %v15_v54 = vld [vmem:[%s376_s1] sm:$0xff]  ;;  %s188_s1 = smov [#allocation2]  }
  0x19   :  { %s148_s24 = sshll.u32 %s188_s1, 4  ;;  %s149_s24 = int_to_ptr.vmem [resolvable:$true] %s148_s24 }
  0x1a   :  { %116 = vmatpush.xpose.msra.mxu2 %v44_v26  ;;  %76 = vmatpush.xpose.msra.mxu0 %v42_v27 }
  0x1b   :  { %96 = vmatpush.xpose.msra.mxu1 %v43_v28 }
  0x1e   :  { %117 = vmatpush.xpose.msra.mxu2 %v41_v29  ;;  %77 = vmatpush.xpose.msra.mxu0 %v39_v30 }
  0x1f   :  { %97 = vmatpush.xpose.msra.mxu1 %v40_v31 }
  0x22   :  { %118 = vmatpush.xpose.msra.mxu2 %v38_v32  ;;  %78 = vmatpush.xpose.msra.mxu0 %v36_v33 }
  0x23   :  { %98 = vmatpush.xpose.msra.mxu1 %v37_v34 }
  0x26   :  { %119 = vmatpush.xpose.msra.mxu2 %v35_v35  ;;  %79 = vmatpush.xpose.msra.mxu0 %v33_v36 }
  0x27   :  { %99 = vmatpush.xpose.msra.mxu1 %v34_v37 }
  0x2a   :  { %120 = vmatpush.xpose.msra.mxu2 %v32_v38  ;;  %80 = vmatpush.xpose.msra.mxu0 %v30_v39 }
  0x2b   :  { %100 = vmatpush.xpose.msra.mxu1 %v31_v40 }
  0x2e   :  { %121 = vmatpush.xpose.msra.mxu2 %v29_v41  ;;  %81 = vmatpush.xpose.msra.mxu0 %v27_v42 }
  0x2f   :  { %101 = vmatpush.xpose.msra.mxu1 %v28_v43 }
  0x32   :  { %122 = vmatpush.xpose.msra.mxu2 %v26_v44  ;;  %82 = vmatpush.xpose.msra.mxu0 %v24_v45 }
  0x33   :  { %102 = vmatpush.xpose.msra.mxu1 %v25_v46 }
  0x36   :  { %123 = vmatpush.xpose.msra.mxu2 %v23_v47  ;;  %83 = vmatpush.xpose.msra.mxu0 %v21_v48 }
  0x37   :  { %103 = vmatpush.xpose.msra.mxu1 %v22_v49 }
  0x3a   :  { %124 = vmatpush.xpose.msra.mxu2 %v20_v50  ;;  %84 = vmatpush.xpose.msra.mxu0 %v18_v51 }
  0x3b   :  { %104 = vmatpush.xpose.msra.mxu1 %v19_v52 }
  0x3e   :  { %125 = vmatpush.xpose.msra.mxu2 %v17_v53  ;;  %85 = vmatpush.xpose.msra.mxu0 %v15_v54 }
  0x3f   :  { %105 = vmatpush.xpose.msra.mxu1 %v16_v55 }
  0x41   :  { %126 = vmatmul.f32.vlgmr.msra.gmra.mxu2 %v253_v14  ;;  %86 = vmatmul.f32.vlgmr.msra.gmra.mxu0 %v243_v12 }
  0x42   :  { %106 = vmatmul.f32.vlgmr.msra.gmra.mxu1 %v248_v13 }
  0x83   :  { %v69_v56 = vpop.xlane.xlu0 %68 }
  0x84   :  { %v130_v57 = vmax.f32 %v69_v56, 1e-24 }
  0x86   :  { %160 = vrsqrt.f32 %v130_v57  ;;  %vm137_vm0 = vweird.f32 %v130_v57 }
  0x8c   :  { %v161_v58 = vpop.eup %160 }
  0x8d   :  { %v132_v59 = vmul.f32 %v161_v58, %v130_v57  ;;  %vm138_vm1 = vweird.f32 %v161_v58 }
  0x8e   :  { %vm139_vm2 = vmor %vm137_vm0, %vm138_vm1 }
  0x8f   :  { %v133_v60 = vmul.f32 %v161_v58, %v132_v59 }
  0x91   :  { %v134_v61 = vmul.f32 0.5, %v133_v60 }
  0x93   :  { %v135_v62 = vsub.f32 1.5, %v134_v61 }
  0x95   :  { %v136_v2 = vmul.f32 %v161_v58, %v135_v62 }
  0x97   :  { %v140_v5 = vsel %vm139_vm2, %v161_v58, %v136_v2 }
  0xbe   :  { %v87_v63 = vpop.f32.mrf.mxu0 }
  0xbf   :  { %v107_v0 = vpop.f32.mrf.mxu1 }
  0xc0   :  { %v108_v1 = vadd.f32 %v107_v0, %v87_v63 }
  0xc4   :  { %v127_v3 = vpop.f32.mrf.mxu2 }
  0xc5   :  { %v128_v4 = vadd.f32 %v127_v3, %v108_v1 }
  0xc7   :  { %v141_v6 = vmul.f32 %v140_v5, %v128_v4 }
  0xc9   :  { %142 = vst [vmem:[#allocation2] sm:$0xff] %v141_v6 }
  0xca   :  { %153 = dma.vmem_to_hbm [thread:$0]  %s149_s24, 128, %s151_s27, [#allocation3]  }
  0xcb   :  { %186 = dma.done.wait [#allocation3], 128  }
  0xcc   :  { %187 = vsyncadd [#allocation3], 4294967168 }
  0xcd   :  { %158 = vsyncpa [#allocation3], 1 }

</bundles_post_ra>
